<compile_context>
chip_gen: v5e
topology: v5e:2x2
jax: 0.10.0
libtpu: 0.0.40
codegen_flags: <defaults>
</compile_context>

<pallas_src>
import functools

import jax
import jax.numpy as jnp
from jax.experimental import pallas as pl
from jax.experimental.pallas import tpu as pltpu


def _round_up(v, m):
    return (v + m - 1) // m * m


def _two_tower_kernel(x_ref, w1t_ref, b1_ref, wu2t_ref, wi2t_ref,
                      bu2_ref, bi2_ref, out_ref, *, hp):
    # ---- fused layer 1 of both towers: (2Hp, Dp) @ (Dp, TB) on the MXU ----
    h = jnp.dot(w1t_ref[...], x_ref[...],
                preferred_element_type=jnp.float32)            # (2Hp, TB) f32
    h = jnp.maximum(h + b1_ref[...], 0.0)                      # bias + ReLU in f32
    h_bf = h.astype(jnp.bfloat16)                              # MXU operand for layer 2

    hu = h_bf[:hp, :]                                          # user hidden (Hp, TB)
    hi = h_bf[hp:, :]                                          # item hidden (Hp, TB)

    # ---- layer 2: one matmul per tower (no zero-FLOP block-diagonal) ----
    ue = jnp.dot(wu2t_ref[...], hu,
                 preferred_element_type=jnp.float32) + bu2_ref[...]   # (Ep, TB)
    ie = jnp.dot(wi2t_ref[...], hi,
                 preferred_element_type=jnp.float32) + bi2_ref[...]   # (Ep, TB)

    # ---- similarity: per-column (per-example) dot product + sigmoid ----
    sim = jnp.sum(ue * ie, axis=0, keepdims=True)              # (1, TB) lane-dense
    out_ref[...] = jax.nn.sigmoid(sim).astype(out_ref.dtype)


def prepare_two_tower_params(params):
    """One-time packing of tower weights (pad / fuse / transpose / bf16 cast)."""
    din, hid = params["wu1"].shape
    emb = params["wu2"].shape[1]
    dp = _round_up(din, 16)    # bf16 sublane padding only (no x128 lane padding)
    hp = _round_up(hid, 128)   # hidden is a lane/contraction dim in layer 2
    ep = _round_up(emb, 16)    # embedding only ever sits on the sublane axis

    f32, bf16 = jnp.float32, jnp.bfloat16

    def pad2(w, r, c):
        w = w.astype(f32)
        return jnp.pad(w, ((0, r - w.shape[0]), (0, c - w.shape[1])))

    wu1 = pad2(params["wu1"], dp, hp)
    wi1 = pad2(params["wi1"], dp, hp)
    wu2 = pad2(params["wu2"], hp, ep)
    wi2 = pad2(params["wi2"], hp, ep)
    bu1 = pad2(params["bu1"], 1, hp)
    bi1 = pad2(params["bi1"], 1, hp)
    bu2 = pad2(params["bu2"], 1, ep)
    bi2 = pad2(params["bi2"], 1, ep)

    return {
        # fused layer-1 weight, pre-transposed for (feature, batch) orientation
        "w1t": jnp.concatenate([wu1, wi1], axis=1).T.astype(bf16),   # (2Hp, Dp)
        "b1":  jnp.concatenate([bu1, bi1], axis=1).T,                # (2Hp, 1) f32
        # per-tower layer-2 weights (no block-diagonal zero padding)
        "wu2t": wu2.T.astype(bf16),                                  # (Ep, Hp)
        "wi2t": wi2.T.astype(bf16),
        "bu2":  bu2.T,                                               # (Ep, 1) f32
        "bi2":  bi2.T,
        "dims": (din, hid, emb, dp, hp, ep),
    }


def two_tower_ranking_forward(x, prepared, *, tile_b=512):
    """x: (B, Din) f32.  Returns (B, 1) f32 sigmoid similarity scores."""
    B, din = x.shape
    din_p, _hid, _emb, dp, hp, ep = prepared["dims"]
    assert din == din_p, "input feature dim does not match prepared params"

    # ---- batch tile selection ----
    b_ceil = _round_up(B, 128)
    tb = max(128, _round_up(min(tile_b, b_ceil), 128))
    # Keep >=2 batch tiles whenever possible so v7x's 2 TensorCores both get work.
    if b_ceil >= 256:
        tb = min(tb, max(128, (b_ceil // 2) // 128 * 128))

    # VMEM working-set budget (v7x-safe): shrink tile until it fits ~40 MiB.
    def vmem_bytes(tb_):
        w_bytes = 2 * ((2 * hp * dp + 2 * ep * hp) * 2 + (2 * hp + 2 * ep) * 4)
        x_bytes = 2 * dp * tb_ * 2          # double-buffered bf16 x tile
        o_bytes = 2 * tb_ * 4               # double-buffered (1, TB) f32 scores
        tmp_bytes = (2 * hp + 2 * ep) * tb_ * 4   # h / ue / ie f32 intermediates
        return w_bytes + x_bytes + o_bytes + tmp_bytes

    while tb > 128 and vmem_bytes(tb) > 40 * 1024 * 1024:
        tb -= 128

    b_pad = _round_up(B, tb)
    n_tiles = b_pad // tb

    # x streamed in bf16, (feature, batch) orientation: batch on the lane axis.
    x_t = jnp.zeros((dp, b_pad), jnp.bfloat16).at[:din, :B].set(
        x.T.astype(jnp.bfloat16))

    vmem_limit = int(min(48 * 1024 * 1024,
                         max(32 * 1024 * 1024, 2 * vmem_bytes(tb))))

    kernel = functools.partial(_two_tower_kernel, hp=hp)

    out = pl.pallas_call(
        kernel,
        out_shape=jax.ShapeDtypeStruct((1, b_pad), jnp.float32),
        grid=(n_tiles,),
        in_specs=[
            pl.BlockSpec((dp, tb), lambda i: (0, i)),        # x tile streams
            pl.BlockSpec((2 * hp, dp), lambda i: (0, 0)),    # weights stay resident
            pl.BlockSpec((2 * hp, 1), lambda i: (0, 0)),
            pl.BlockSpec((ep, hp), lambda i: (0, 0)),
            pl.BlockSpec((ep, hp), lambda i: (0, 0)),
            pl.BlockSpec((ep, 1), lambda i: (0, 0)),
            pl.BlockSpec((ep, 1), lambda i: (0, 0)),
        ],
        out_specs=pl.BlockSpec((1, tb), lambda i: (0, i)),   # lane-dense scores
        compiler_params=pltpu.CompilerParams(
            dimension_semantics=("parallel",),
            vmem_limit_bytes=vmem_limit),
    )(x_t, prepared["w1t"], prepared["b1"], prepared["wu2t"],
      prepared["wi2t"], prepared["bu2"], prepared["bi2"])

    return out[0, :B].reshape(B, 1).astype(jnp.float32)


def _init_params(key, din, hidden, emb):
    ks = jax.random.split(key, 8)
    s1 = 1.0 / jnp.sqrt(din)
    s2 = 1.0 / jnp.sqrt(hidden)
    return {
        # user tower
        "wu1": jax.random.uniform(ks[0], (din, hidden), jnp.float32, -s1, s1),
        "bu1": jax.random.uniform(ks[1], (1, hidden), jnp.float32, -s1, s1),
        "wu2": jax.random.uniform(ks[2], (hidden, emb), jnp.float32, -s2, s2),
        "bu2": jax.random.uniform(ks[3], (1, emb), jnp.float32, -s2, s2),
        # item tower
        "wi1": jax.random.uniform(ks[4], (din, hidden), jnp.float32, -s1, s1),
        "bi1": jax.random.uniform(ks[5], (1, hidden), jnp.float32, -s1, s1),
        "wi2": jax.random.uniform(ks[6], (hidden, emb), jnp.float32, -s2, s2),
        "bi2": jax.random.uniform(ks[7], (1, emb), jnp.float32, -s2, s2),
    }


def _reference(x, p):
    hu = jnp.maximum(x @ p["wu1"] + p["bu1"], 0.0)
    ue = hu @ p["wu2"] + p["bu2"]
    hi = jnp.maximum(x @ p["wi1"] + p["bi1"], 0.0)
    ie = hi @ p["wi2"] + p["bi2"]
    return jax.nn.sigmoid(jnp.sum(ue * ie, axis=-1, keepdims=True))


if __name__ == "__main__":
    B, DIN, HIDDEN, EMB = 200, 16, 32, 32   # B=200 -> 2 batch tiles of 128
    key = jax.random.PRNGKey(0)
    kx, kp = jax.random.split(key)
    x = jax.random.normal(kx, (B, DIN), jnp.float32)
    params = _init_params(kp, DIN, HIDDEN, EMB)

    prepared = prepare_two_tower_params(params)          # one-time weight packing
    out = two_tower_ranking_forward(x, prepared)
    out = jax.block_until_ready(out)

    ref = _reference(x, params)  # f32 reference; kernel uses bf16 MXU w/ f32 accum
    assert out.shape == (B, 1)
    assert jnp.all(jnp.isfinite(out))
    assert jnp.allclose(out, ref, atol=3e-2, rtol=3e-2), (out, ref)
    print("KERNEL_OK")
</pallas_src>

<mosaic_0001>
module attributes {stable_mosaic.version = 11 : i64} {
  func.func @_two_tower_kernel(%arg0: i32, %arg1: memref<16x128xbf16, #tpu.memory_space<vmem>>, %arg2: memref<256x16xbf16, #tpu.memory_space<vmem>>, %arg3: memref<256x1xf32, #tpu.memory_space<vmem>>, %arg4: memref<32x128xbf16, #tpu.memory_space<vmem>>, %arg5: memref<32x128xbf16, #tpu.memory_space<vmem>>, %arg6: memref<32x1xf32, #tpu.memory_space<vmem>>, %arg7: memref<32x1xf32, #tpu.memory_space<vmem>>, %arg8: memref<1x128xf32, #tpu.memory_space<vmem>>) attributes {dimension_semantics = [#tpu.dimension_semantics<parallel>], iteration_bounds = array<i64: 2>, scalar_prefetch = 0 : i64, scratch_operands = 0 : i64, tpu.core_type = #tpu.core_type<tc>, window_params = [{transform_indices = @transform_0, window_bounds = array<i64: 16, 128>}, {pipeline_mode = #tpu.pipeline_mode<synchronous>, transform_indices = @transform_1, window_bounds = array<i64: 256, 16>}, {pipeline_mode = #tpu.pipeline_mode<synchronous>, transform_indices = @transform_2, window_bounds = array<i64: 256, 1>}, {pipeline_mode = #tpu.pipeline_mode<synchronous>, transform_indices = @transform_3, window_bounds = array<i64: 32, 128>}, {pipeline_mode = #tpu.pipeline_mode<synchronous>, transform_indices = @transform_4, window_bounds = array<i64: 32, 128>}, {pipeline_mode = #tpu.pipeline_mode<synchronous>, transform_indices = @transform_5, window_bounds = array<i64: 32, 1>}, {pipeline_mode = #tpu.pipeline_mode<synchronous>, transform_indices = @transform_6, window_bounds = array<i64: 32, 1>}, {transform_indices = @transform_7, window_bounds = array<i64: 1, 128>}]} {
    %c0 = arith.constant 0 : index
    %c0_0 = arith.constant 0 : index
    %0 = vector.load %arg2[%c0, %c0_0] : memref<256x16xbf16, #tpu.memory_space<vmem>>, vector<256x16xbf16>
    %c0_1 = arith.constant 0 : index
    %c0_2 = arith.constant 0 : index
    %1 = vector.load %arg1[%c0_1, %c0_2] : memref<16x128xbf16, #tpu.memory_space<vmem>>, vector<16x128xbf16>
    %cst = arith.constant dense<0.000000e+00> : vector<256x128xf32>
    %2 = tpu.matmul %0, %1, %cst {dimension_numbers = #tpu.dot_dimension_numbers<[1], [0], [0], [1], [0, 0, 1, 1], [], []>} : vector<256x16xbf16>, vector<16x128xbf16>, vector<256x128xf32> -> vector<256x128xf32>
    %c0_3 = arith.constant 0 : index
    %c0_4 = arith.constant 0 : index
    %3 = vector.load %arg3[%c0_3, %c0_4] : memref<256x1xf32, #tpu.memory_space<vmem>>, vector<256x1xf32>
    %4 = vector.broadcast %3 : vector<256x1xf32> to vector<256x128xf32>
    %5 = arith.addf %2, %4 : vector<256x128xf32>
    %cst_5 = arith.constant 0.000000e+00 : f32
    %6 = vector.broadcast %cst_5 : f32 to vector<256x128xf32>
    %7 = arith.maximumf %5, %6 : vector<256x128xf32>
    %8 = arith.truncf %7 : vector<256x128xf32> to vector<256x128xbf16>
    %9 = vector.extract_strided_slice %8 {offsets = [0, 0], sizes = [128, 128], strides = [1, 1]} : vector<256x128xbf16> to vector<128x128xbf16>
    %10 = vector.extract_strided_slice %8 {offsets = [128, 0], sizes = [128, 128], strides = [1, 1]} : vector<256x128xbf16> to vector<128x128xbf16>
    %c0_6 = arith.constant 0 : index
    %c0_7 = arith.constant 0 : index
    %11 = vector.load %arg4[%c0_6, %c0_7] : memref<32x128xbf16, #tpu.memory_space<vmem>>, vector<32x128xbf16>
    %cst_8 = arith.constant dense<0.000000e+00> : vector<32x128xf32>
    %12 = tpu.matmul %11, %9, %cst_8 {dimension_numbers = #tpu.dot_dimension_numbers<[1], [0], [0], [1], [0, 0, 1, 1], [], []>} : vector<32x128xbf16>, vector<128x128xbf16>, vector<32x128xf32> -> vector<32x128xf32>
    %c0_9 = arith.constant 0 : index
    %c0_10 = arith.constant 0 : index
    %13 = vector.load %arg6[%c0_9, %c0_10] : memref<32x1xf32, #tpu.memory_space<vmem>>, vector<32x1xf32>
    %14 = vector.broadcast %13 : vector<32x1xf32> to vector<32x128xf32>
    %15 = arith.addf %12, %14 : vector<32x128xf32>
    %c0_11 = arith.constant 0 : index
    %c0_12 = arith.constant 0 : index
    %16 = vector.load %arg5[%c0_11, %c0_12] : memref<32x128xbf16, #tpu.memory_space<vmem>>, vector<32x128xbf16>
    %cst_13 = arith.constant dense<0.000000e+00> : vector<32x128xf32>
    %17 = tpu.matmul %16, %10, %cst_13 {dimension_numbers = #tpu.dot_dimension_numbers<[1], [0], [0], [1], [0, 0, 1, 1], [], []>} : vector<32x128xbf16>, vector<128x128xbf16>, vector<32x128xf32> -> vector<32x128xf32>
    %c0_14 = arith.constant 0 : index
    %c0_15 = arith.constant 0 : index
    %18 = vector.load %arg7[%c0_14, %c0_15] : memref<32x1xf32, #tpu.memory_space<vmem>>, vector<32x1xf32>
    %19 = vector.broadcast %18 : vector<32x1xf32> to vector<32x128xf32>
    %20 = arith.addf %17, %19 : vector<32x128xf32>
    %21 = arith.mulf %15, %20 : vector<32x128xf32>
    %cst_16 = arith.constant dense<0.000000e+00> : vector<128xf32>
    %22 = vector.multi_reduction <add>, %21, %cst_16 [0] : vector<32x128xf32> to vector<128xf32>
    %23 = vector.shape_cast %22 : vector<128xf32> to vector<1x128xf32>
    %24 = arith.negf %23 : vector<1x128xf32>
    %25 = math.exp %24 : vector<1x128xf32>
    %cst_17 = arith.constant 1.000000e+00 : f32
    %26 = vector.broadcast %cst_17 : f32 to vector<1x128xf32>
    %27 = arith.addf %26, %25 : vector<1x128xf32>
    %28 = arith.divf %26, %27 : vector<1x128xf32>
    %c0_18 = arith.constant 0 : index
    %c0_19 = arith.constant 0 : index
    %29 = vector.load %arg8[%c0_18, %c0_19] : memref<1x128xf32, #tpu.memory_space<vmem>>, vector<1x128xf32>
    tpu.vector_store %arg8[%c0_18, %c0_19], %28 {strides = array<i32>} : memref<1x128xf32, #tpu.memory_space<vmem>>, vector<1x128xf32>,
    return
  }
  func.func @transform_0(%arg0: i32) -> (i32, i32) {
    %c0_i32 = arith.constant 0 : i32
    %c0_i32_0 = arith.constant 0 : i32
    return %c0_i32, %arg0 : i32, i32
  }
  func.func @transform_1(%arg0: i32) -> (i32, i32) {
    %c0_i32 = arith.constant 0 : i32
    %c0_i32_0 = arith.constant 0 : i32
    %c0_i32_1 = arith.constant 0 : i32
    return %c0_i32, %c0_i32_0 : i32, i32
  }
  func.func @transform_2(%arg0: i32) -> (i32, i32) {
    %c0_i32 = arith.constant 0 : i32
    %c0_i32_0 = arith.constant 0 : i32
    %c0_i32_1 = arith.constant 0 : i32
    return %c0_i32, %c0_i32_0 : i32, i32
  }
  func.func @transform_3(%arg0: i32) -> (i32, i32) {
    %c0_i32 = arith.constant 0 : i32
    %c0_i32_0 = arith.constant 0 : i32
    %c0_i32_1 = arith.constant 0 : i32
    return %c0_i32, %c0_i32_0 : i32, i32
  }
  func.func @transform_4(%arg0: i32) -> (i32, i32) {
    %c0_i32 = arith.constant 0 : i32
    %c0_i32_0 = arith.constant 0 : i32
    %c0_i32_1 = arith.constant 0 : i32
    return %c0_i32, %c0_i32_0 : i32, i32
  }
  func.func @transform_5(%arg0: i32) -> (i32, i32) {
    %c0_i32 = arith.constant 0 : i32
    %c0_i32_0 = arith.constant 0 : i32
    %c0_i32_1 = arith.constant 0 : i32
    return %c0_i32, %c0_i32_0 : i32, i32
  }
  func.func @transform_6(%arg0: i32) -> (i32, i32) {
    %c0_i32 = arith.constant 0 : i32
    %c0_i32_0 = arith.constant 0 : i32
    %c0_i32_1 = arith.constant 0 : i32
    return %c0_i32, %c0_i32_0 : i32, i32
  }
  func.func @transform_7(%arg0: i32) -> (i32, i32) {
    %c0_i32 = arith.constant 0 : i32
    %c0_i32_0 = arith.constant 0 : i32
    return %c0_i32, %arg0 : i32, i32
  }
}

</mosaic_0001>

<bundles_post_ra>
// kernel: tpu_custom_call.1
= control target key start
LH: loop header
LB: loop body
LE: loop exit
PB: predicated region body
PF: predicated region fallthrough
CT: control target
= control target key end

     0   :  { %12 = vsyncpa [#allocation4], 0  ;;  %s1822_s0 = inlined_call_operand.vmem [shape: bf16[16,256], index: 0, kind: input, shape index: {}]   ;;  %s1823_s1 = inlined_call_operand.vmem [shape: bf16[256,16], index: 1, kind: input, shape index: {}]   ;;  %s1824_s2 = inlined_call_operand.vmem [shape: f32[256,1], index: 2, kind: input, shape index: {}]   ;;  %s1825_s3 = inlined_call_operand.vmem [shape: bf16[32,128], index: 3, kind: input, shape index: {}]   ;;  %s1826_s4 = inlined_call_operand.vmem [shape: bf16[32,128], index: 4, kind: input, shape index: {}]   ;;  %s1827_s5 = inlined_call_operand.vmem [shape: f32[32,1], index: 5, kind: input, shape index: {}]   ;;  %s1828_s6 = inlined_call_operand.vmem [shape: f32[32,1], index: 6, kind: input, shape index: {}]   ;;  %s1829_s7 = inlined_call_operand.hbm [shape: f32[1,256], index: 7, kind: output, shape index: {}]  }
   0x1   :  { %14 = vsyncpa [#allocation4 + $0x1], 0  ;;  %s1444_s24 = smov 0   ;;  %s1446_s25 = smov 0  }
   0x2   :  { %s1448_s26 = smov 0   ;;  %s1450_s27 = smov 0  }
   0x3 LB: > { %s1158_s28 = sadd.s32 4294967295, %s1401_s27   ;;  %s1159_s29 = sadd.s32 4294967294, %s1401_s27   ;;  %s1401_s27 = sphi %s1450_s27, %s1835_s27   ;;  %s1397_s26 = sphi %s1448_s26, %s1834_s26   ;;  %s1393_s25 = sphi %s1446_s25, %s1833_s25   ;;  %s1389_s24 = sphi %s1444_s24, %s1832_s24  }
   0x4   : > { %s1467_s30 = sadd.s32 1, %s1401_s27   ;;  %s27_s8 = sadd.s32 1, %s1397_s26 }
   0x5   : > { %s24_s9 = ssub.s32 %s1401_s27, %s1467_s30  ;;  %p34_p0 = scmp.ne.s32.totalorder %s1397_s26, %s1393_s25 }
   0x6   : > { %p25_p1 = scmp.eq.s32.totalorder %s24_s9, 0  ;;  %p35_p2 = scmp.eq.s32.totalorder %s1401_s27, 0 }
   0x7   : > { %p190_p3 = scmp.eq.s32.totalorder %s1158_s28, 1  ;;  %p195_p4 = scmp.ne.s32.totalorder %s1393_s25, %s1389_s24 }
   0x8   : > { %s1480_s10 = scalar_select %p25_p1, %s1397_s26, %s27_s8  }
   0x9   : > { %p36_p5 = por %p35_p2, %p34_p0  ;;  %p1482_p6 = por %p190_p3, %p34_p0 }
   0xa   : > { %p196_p7 = scmp.eq.s32.totalorder %s1159_s29, 1  ;;  %p1161_p9 = scmp.ge.s32.totalorder %s1401_s27, 2 }
   0xc   : > { %p1486_p8 = por %p196_p7, %p195_p4  ;;  %230 = sbr.rel (%p1161_p9) target bundleno = 23 (0x17), region = 40 }
  0x11   : > { %233 = sbr.rel (!%p36_p5) target bundleno = 23 (0x17), region = 44  ;;  %s235_s13 = sand.u32 (%p36_p5), 1, %s1397_s26  }
  0x12   : > { %s1163_s14 = sshll.u32 (%p36_p5), %s1401_s27, 2  ;;  %s1162_s15 = sshll.u32 (%p36_p5), %s235_s13, 3 }
  0x13   : > { %s239_s18 = scalar_lea.vmem (%p36_p5), %s1822_s0, %s1163_s14  ;;  %s237_s19 = scalar_lea.vmem (%p36_p5), [#allocation2], %s1162_s15 }
  0x14   : > { %v256_v0 = vld [vmem:[%s239_s18] sm:$0xf] (%p36_p5)  ;;  %v258_v1 = vld [vmem:[%s239_s18 + $0x8] sm:$0xf] (%p36_p5) }
  0x15   : > { %257 = vst [vmem:[%s237_s19] sm:$0xf] (%p36_p5), %v256_v0 }
  0x16   : > { %259 = vst [vmem:[%s237_s19 + $0x4] sm:$0xf] %v258_v1 }
  0x17 PF: > { %p1164_p10 = scmp.ge.s32.totalorder %s1401_s27, 1  ;;  %p286_p11 = scmp.lt.s32.totalorder %s1401_s27, 3 }
  0x19   : > { %p287_p12 = pnand %p1164_p10, %p286_p11 }
  0x1a   : > { %s1510_s9 = sand.u32 (!%p287_p12), 1, %s1393_s25   ;;  %s1359_s22 = scalar_lea.hbm (!%p287_p12), %s1829_s7, 2 }
  0x1b   : > { %290 = sbr.rel (%p287_p12) target bundleno = 506 (0x1fa), region = 85  ;;  %s1165_s13 = sshll.u32 (!%p287_p12), %s1510_s9, 3 }
  0x1c   : > { %s295_s14 = scalar_lea.vmem (!%p287_p12), [#allocation2], %s1165_s13  ;;  %s322_s15 = scalar_lea.vmem (!%p287_p12), [#allocation3], %s1510_s9 }
  0x1d   : > { %s1096_s16 = sshll.u32 (!%p287_p12), %s322_s15, 4  ;;  %s1097_s16 = int_to_ptr.vmem [resolvable:$true] %s1096_s16 }
  0x20   : > { %v388_v2 = vld [vmem:[%s1824_s2 + $0xf0] sm:$0xff]  ;;  %v386_v3 = vld [vmem:[%s1824_s2 + $0xe0] sm:$0xff]  ;;  %v1403_v5 = vmov 0   ;;  %vm636_vm0 = vcmask 130048   ;;  %v387_v10 = vld [vmem:[%s1824_s2 + $0xe8] sm:$0xff] }
  0x21   : > { %v372_v4 = vld [vmem:[%s1824_s2 + $0x70] sm:$0xff]  ;;  %1334 = vset.pattern.permute.xlu2 %v1403_v5  ;;  %1333 = vset.pattern.permute.xlu1 %v1403_v5  ;;  %v1285_v6 = vld [vmem:[%s295_s14] sm:$0xff]  ;;  %v389_v11 = vld [vmem:[%s1824_s2 + $0xf8] sm:$0xff]  ;;  %s1094_s14 = scalar_lea.hbm %s1829_s7, %s1158_s28  ;;  %s1086_s28 = scalar_lea.sflag [#allocation4], %s1510_s9 }
  0x22   : > { %1332 = vset.pattern.permute.xlu0 %v1403_v5  ;;  %532 = vperm.xlu1 %1333, %v386_v3   ;;  %v1269_v7 = vld [vmem:[%s1823_s1] sm:$0xff]  ;;  %v1275_v8 = vld [vmem:[%s1823_s1 + $0x30] sm:$0xff]  ;;  %v373_v12 = vld [vmem:[%s1824_s2 + $0x78] sm:$0xff]  ;;  %s1098_s17 = sshll.u32 %s1094_s14, 4  ;;  %s1099_s17 = int_to_ptr.hbm [resolvable:$true] %s1098_s17 }
  0x23   : > { %542 = vperm.xlu0 %1332, %v388_v2   ;;  %462 = vperm.xlu2 %1334, %v372_v4   ;;  %v1279_v9 = vld [vmem:[%s1823_s1 + $0x50] sm:$0xff]  ;;  %v385_v13 = vld [vmem:[%s1824_s2 + $0xd8] sm:$0xff]  ;;  %v370_v15 = vld [vmem:[%s1824_s2 + $0x60] sm:$0xff]  ;;  %s1353_s18 = sshra.s32 %s1099_s17, 4  ;;  %s1354_s18 = int_to_ptr.hbm [resolvable:$true] %s1353_s18 }
  0x24   : > { %692 = vmatpush.bf16.msra.mxu0 %v1285_v6  ;;  %1290 = vmatpush.bf16.msra.mxu1 %v1285_v6  ;;  %v384_v14 = vld [vmem:[%s1824_s2 + $0xd0] sm:$0xff]  ;;  %v1270_v16 = vld [vmem:[%s1823_s1 + $0x8] sm:$0xff]  ;;  %v1276_v17 = vld [vmem:[%s1823_s1 + $0x38] sm:$0xff]  ;;  %s1355_s19 = scalar_lea.hbm %s1354_s18, 1  ;;  %p1360_p2 = scmp.lt.s32.totalorder %s1354_s18, %s1829_s7 }
  0x25   : > { %1291 = vmatpush.bf16.msra.mxu3 %v1285_v6  ;;  %v1280_v18 = vld [vmem:[%s1823_s1 + $0x58] sm:$0xff]  ;;  %v382_v19 = vld [vmem:[%s1824_s2 + $0xc0] sm:$0xff]  ;;  %v371_v20 = vld [vmem:[%s1824_s2 + $0x68] sm:$0xff]  ;;  %p1356_p13 = scmp.ne.s32.totalorder %s1354_s18, %s1355_s19  ;;  %p1361_p3 = scmp.lt.s32.totalorder %s1359_s22, %s1355_s19 }
  0x26   : > { %v383_v21 = vld [vmem:[%s1824_s2 + $0xc8] sm:$0xff]  ;;  %v369_v22 = vld [vmem:[%s1824_s2 + $0x58] sm:$0xff]  ;;  %v380_v23 = vld [vmem:[%s1824_s2 + $0xb0] sm:$0xff] }
  0x27   : > { %1234 = vmatmul.msk.bf16.vlgmr.msra.gmra.mxu0 %vm636_vm0, %v1269_v7  ;;  %1240 = vmatmul.msk.bf16.vlgmr.msra.gmra.mxu1 %vm636_vm0, %v1275_v8  ;;  %v368_v24 = vld [vmem:[%s1824_s2 + $0x50] sm:$0xff]  ;;  %v1277_v26 = vld [vmem:[%s1823_s1 + $0x40] sm:$0xff]  ;;  %v381_v29 = vld [vmem:[%s1824_s2 + $0xb8] sm:$0xff]  ;;  %p1357_p0 = pnand %p1356_p13, %p1482_p6  ;;  %p1362_p4 = por %p1361_p3, %p1360_p2 }
  0x28   : > { %1244 = vmatmul.msk.bf16.vlgmr.msra.gmra.mxu3 %vm636_vm0, %v1279_v9  ;;  %v1271_v25 = vld [vmem:[%s1823_s1 + $0x10] sm:$0xff]  ;;  %v1281_v27 = vld [vmem:[%s1823_s1 + $0x60] sm:$0xff]  ;;  %v367_v30 = vld [vmem:[%s1824_s2 + $0x48] sm:$0xff] }
  0x29   : > { %v366_v28 = vld [vmem:[%s1824_s2 + $0x40] sm:$0xff]  ;;  %v379_v31 = vld [vmem:[%s1824_s2 + $0xa8] sm:$0xff]  ;;  %v364_v33 = vld [vmem:[%s1824_s2 + $0x30] sm:$0xff]  ;;  %p1358_p1 = pneg %p1357_p0 }
  0x2a   : > { %537 = vperm.xlu1 %1333, %v387_v10   ;;  %v378_v32 = vld [vmem:[%s1824_s2 + $0xa0] sm:$0xff]  ;;  %v1272_v34 = vld [vmem:[%s1823_s1 + $0x18] sm:$0xff]  ;;  %v1278_v35 = vld [vmem:[%s1823_s1 + $0x48] sm:$0xff] }
  0x2b   : > { %547 = vperm.xlu0 %1332, %v389_v11   ;;  %467 = vperm.xlu2 %1334, %v373_v12   ;;  %v1282_v36 = vld [vmem:[%s1823_s1 + $0x68] sm:$0xff]  ;;  %v376_v37 = vld [vmem:[%s1824_s2 + $0x90] sm:$0xff]  ;;  %v365_v38 = vld [vmem:[%s1824_s2 + $0x38] sm:$0xff]  ;;  %p1363_p5 = pnand %p1362_p4, %p1358_p1 }
  0x2c   : > { %v377_v39 = vld [vmem:[%s1824_s2 + $0x98] sm:$0xff]  ;;  %v363_v40 = vld [vmem:[%s1824_s2 + $0x28] sm:$0xff]  ;;  %v374_v41 = vld [vmem:[%s1824_s2 + $0x80] sm:$0xff] }
  0x2d   : > { %v362_v42 = vld [vmem:[%s1824_s2 + $0x20] sm:$0xff]  ;;  %v1283_v44 = vld [vmem:[%s1823_s1 + $0x70] sm:$0xff]  ;;  %v375_v46 = vld [vmem:[%s1824_s2 + $0x88] sm:$0xff] }
  0x2e   : > { %v1273_v43 = vld [vmem:[%s1823_s1 + $0x20] sm:$0xff]  ;;  %v360_v45 = vld [vmem:[%s1824_s2 + $0x10] sm:$0xff]  ;;  %v361_v47 = vld [vmem:[%s1824_s2 + $0x18] sm:$0xff] }
  0x2f   : > { %v359_v48 = vld [vmem:[%s1824_s2 + $0x8] sm:$0xff]  ;;  %v842_v49 = vld [vmem:[%s1827_s5] sm:$0xff]  ;;  %v1284_v52 = vld [vmem:[%s1823_s1 + $0x78] sm:$0xff] }
  0x30   : > { %v358_v50 = vld [vmem:[%s1824_s2] sm:$0xff]  ;;  %v1274_v51 = vld [vmem:[%s1823_s1 + $0x28] sm:$0xff]  ;;  %v951_v57 = vld [vmem:[%s1828_s6 + $0x10] sm:$0xff] }
  0x31   : > { %v949_v53 = vld [vmem:[%s1828_s6] sm:$0xff]  ;;  %v950_v54 = vld [vmem:[%s1828_s6 + $0x8] sm:$0xff]  ;;  %v845_v58 = vld [vmem:[%s1827_s5 + $0x18] sm:$0xff] }
  0x32   : > { %527 = vperm.xlu1 %1333, %v385_v13   ;;  %v843_v55 = vld [vmem:[%s1827_s5 + $0x8] sm:$0xff]  ;;  %v844_v59 = vld [vmem:[%s1827_s5 + $0x10] sm:$0xff]  ;;  %v952_v61 = vld [vmem:[%s1828_s6 + $0x18] sm:$0xff] }
  0x33   : > { %522 = vperm.xlu0 %1332, %v384_v14   ;;  %452 = vperm.xlu2 %1334, %v370_v15  }
  0x37   : > { %1235 = vmatmul.msk.bf16.gmra.mxu0 %vm636_vm0, %v1270_v16  ;;  %1241 = vmatmul.msk.bf16.gmra.mxu1 %vm636_vm0, %v1276_v17 }
  0x38   : > { %1245 = vmatmul.msk.bf16.gmra.mxu3 %vm636_vm0, %v1280_v18 }
  0x3a   : > { %512 = vperm.xlu1 %1333, %v382_v19  }
  0x3b   : > { %457 = vperm.xlu0 %1332, %v371_v20   ;;  %517 = vperm.xlu2 %1334, %v383_v21  }
  0x42   : > { %447 = vperm.xlu1 %1333, %v369_v22  }
  0x43   : > { %502 = vperm.xlu2 %1334, %v380_v23   ;;  %442 = vperm.xlu0 %1332, %v368_v24  }
  0x47   : > { %1236 = vmatmul.msk.bf16.gmra.mxu0 %vm636_vm0, %v1271_v25  ;;  %1242 = vmatmul.msk.bf16.gmra.mxu1 %vm636_vm0, %v1277_v26 }
  0x48   : > { %1246 = vmatmul.msk.bf16.gmra.mxu3 %vm636_vm0, %v1281_v27 }
  0x4a   : > { %432 = vperm.xlu1 %1333, %v366_v28  }
  0x4b   : > { %507 = vperm.xlu0 %1332, %v381_v29   ;;  %437 = vperm.xlu2 %1334, %v367_v30  }
  0x52   : > { %497 = vperm.xlu1 %1333, %v379_v31  }
  0x53   : > { %492 = vperm.xlu0 %1332, %v378_v32   ;;  %422 = vperm.xlu2 %1334, %v364_v33  }
  0x57   : > { %1237 = vmatmul.msk.bf16.gmra.mxu0 %vm636_vm0, %v1272_v34  ;;  %1243 = vmatmul.msk.bf16.gmra.mxu1 %vm636_vm0, %v1278_v35 }
  0x58   : > { %1247 = vmatmul.msk.bf16.gmra.mxu3 %vm636_vm0, %v1282_v36 }
  0x5a   : > { %482 = vperm.xlu1 %1333, %v376_v37  }
  0x5b   : > { %427 = vperm.xlu0 %1332, %v365_v38   ;;  %487 = vperm.xlu2 %1334, %v377_v39  }
  0x62   : > { %417 = vperm.xlu1 %1333, %v363_v40  }
  0x63   : > { %472 = vperm.xlu2 %1334, %v374_v41   ;;  %412 = vperm.xlu0 %1332, %v362_v42  }
  0x67   : > { %1238 = vmatmul.msk.bf16.gmra.mxu0 %vm636_vm0, %v1273_v43 }
  0x68   : > { %1248 = vmatmul.msk.bf16.gmra.mxu3 %vm636_vm0, %v1283_v44 }
  0x6a   : > { %402 = vperm.xlu1 %1333, %v360_v45  }
  0x6b   : > { %477 = vperm.xlu0 %1332, %v375_v46   ;;  %407 = vperm.xlu2 %1334, %v361_v47  }
  0x72   : > { %397 = vperm.xlu1 %1333, %v359_v48  }
  0x73   : > { %848 = vperm.xlu2 %1334, %v842_v49   ;;  %392 = vperm.xlu0 %1332, %v358_v50  }
  0x77   : > { %1239 = vmatmul.msk.bf16.gmra.mxu0 %vm636_vm0, %v1274_v51 }
  0x78   : > { %1249 = vmatmul.msk.bf16.gmra.mxu3 %vm636_vm0, %v1284_v52 }
  0x7a   : > { %955 = vperm.xlu1 %1333, %v949_v53  }
  0x7b   : > { %960 = vperm.xlu2 %1334, %v950_v54   ;;  %853 = vperm.xlu0 %1332, %v843_v55  }
  0x7d   : > { %v463_v56 = vpop.permute.xlu2 %462 }
  0x82   : > { %965 = vperm.xlu1 %1333, %v951_v57  }
  0x83   : > { %863 = vperm.xlu2 %1334, %v845_v58   ;;  %858 = vperm.xlu0 %1332, %v844_v59  }
  0x85   : > { %v468_v60 = vpop.permute.xlu2 %467 }
  0x8b   : > { %970 = vperm.xlu0 %1332, %v952_v61  }
  0x8d   : > { %v453_v62 = vpop.permute.xlu2 %452 }
  0x94   : > { %v1688_v63 = vpop.permute.xlu1 %532 }
  0x95   : > { %v1690_v0 = vpop.permute.xlu0 %542  ;;  %v1692_v1 = vpop.permute.xlu2 %517 }
  0x9c   : > { %v1694_v2 = vpop.permute.xlu1 %537 }
  0x9d   : > { %v1696_v3 = vpop.permute.xlu0 %547  ;;  %v503_v5 = vpop.permute.xlu2 %502 }
  0xa4   : > { %v1698_v4 = vpop.permute.xlu1 %527  ;;  %v1702_v7 = vpop.f32.mrf.mxu0 }
  0xa5   : > { %v1700_v6 = vpop.permute.xlu0 %522  ;;  %v724_v8 = vpop.f32.mrf.mxu1 }
  0xa6   : > { %v1708_v14 = vpop.permute.xlu2 %437  ;;  %v725_v21 = vadd.f32 %v724_v8, %v453_v62 }
  0xa8   : > { %v786_v25 = vmax.f32 %v725_v21, 0.0 }
  0xaa   : > { %v818_v35 = vpack.c.bf16 %v786_v25, %v786_v25 }
  0xab   : > { %v744_v10 = vpop.f32.mrf.mxu3 }
  0xac   : > { %v1704_v9 = vpop.permute.xlu1 %512  ;;  %v1706_v12 = vpop.f32.mrf.mxu0  ;;  %v906_v42 = vunpack.c.l.b16 %v818_v35 }
  0xad   : > { %v458_v11 = vpop.permute.xlu0 %457  ;;  %v726_v13 = vpop.f32.mrf.mxu1 }
  0xae   : > { %v1716_v22 = vpop.permute.xlu2 %422  ;;  %v727_v23 = vadd.f32 %v726_v13, %v458_v11 }
  0xb0   : > { %v787_v28 = vmax.f32 %v727_v23, 0.0 }
  0xb2   : > { %v819_v36 = vpack.c.bf16 %v787_v28, %v787_v28 }
  0xb3   : > { %v746_v16 = vpop.f32.mrf.mxu3 }
  0xb4   : > { %v1710_v15 = vpop.permute.xlu1 %447  ;;  %v1714_v18 = vpop.f32.mrf.mxu0  ;;  %v907_v45 = vunpack.c.l.b16 %v819_v36 }
  0xb5   : > { %v1712_v17 = vpop.permute.xlu0 %442  ;;  %v729_v19 = vpop.f32.mrf.mxu1 }
  0xb6   : > { %v730_v20 = vadd.f32 %v729_v19, %v463_v56  ;;  %v1720_v38 = vpop.permute.xlu2 %487  ;;  %v916_v59 = vpack.c.b16 %v907_v45, %v906_v42 }
  0xb8   : > { %v788_v24 = vmax.f32 %v730_v20, 0.0 }
  0xba   : > { %v820_v32 = vpack.c.bf16 %v788_v24, %v788_v24 }
  0xbb   : > { %v749_v27 = vpop.f32.mrf.mxu3 }
  0xbc   : > { %v1718_v26 = vpop.permute.xlu1 %432  ;;  %v701_v30 = vpop.f32.mrf.mxu0  ;;  %v750_v33 = vadd.f32 %v749_v27, %v503_v5  ;;  %v908_v39 = vunpack.c.l.b16 %v820_v32 }
  0xbd   : > { %v508_v29 = vpop.permute.xlu0 %507  ;;  %v731_v31 = vpop.f32.mrf.mxu1 }
  0xbe   : > { %v732_v34 = vadd.f32 %v731_v31, %v468_v60  ;;  %v796_v40 = vmax.f32 %v750_v33, 0.0 }
  0xc0   : > { %v789_v37 = vmax.f32 %v732_v34, 0.0  ;;  %v828_v52 = vpack.c.bf16 %v796_v40, %v796_v40 }
  0xc2   : > { %v821_v41 = vpack.c.bf16 %v789_v37, %v789_v37  ;;  %v1007_v61 = vunpack.c.l.b16 %v828_v52 }
  0xc3   : > { %v751_v44 = vpop.f32.mrf.mxu3 }
  0xc4   : > { %v498_v43 = vpop.permute.xlu1 %497  ;;  %v909_v46 = vunpack.c.l.b16 %v821_v41  ;;  %v752_v49 = vadd.f32 %v751_v44, %v508_v29  ;;  %v1722_v51 = vpop.f32.mrf.mxu0 }
  0xc5   : > { %v493_v47 = vpop.permute.xlu0 %492  ;;  %v747_v48 = vadd.f32 %v746_v16, %v498_v43 }
  0xc6   : > { %v745_v50 = vadd.f32 %v744_v10, %v493_v47  ;;  %v797_v54 = vmax.f32 %v752_v49, 0.0  ;;  %v917_v55 = vpack.c.b16 %v909_v46, %v908_v39  ;;  %v1728_v10 = vpop.permute.xlu2 %472 }
  0xc7   : > { %v795_v53 = vmax.f32 %v747_v48, 0.0 }
  0xc8   : > { %v794_v56 = vmax.f32 %v745_v50, 0.0  ;;  %v829_v58 = vpack.c.bf16 %v797_v54, %v797_v54  ;;  %926 = vmatpush.bf16.msrb.mxu1 %v917_v55 }
  0xc9   : > { %v827_v57 = vpack.c.bf16 %v795_v53, %v795_v53 }
  0xca   : > { %v826_v60 = vpack.c.bf16 %v794_v56, %v794_v56  ;;  %v1008_v5 = vunpack.c.l.b16 %v829_v58  ;;  %v1745_v58 = vpop.f32.mrf.mxu1 }
  0xcb   : > { %v1006_v62 = vunpack.c.l.b16 %v827_v57  ;;  %v1726_v13 = vpop.f32.mrf.mxu3 }
  0xcc   : > { %v1005_v8 = vunpack.c.l.b16 %v826_v60  ;;  %v1724_v11 = vpop.permute.xlu1 %482  ;;  %927 = vmatpush.bf16.msrb.mxu1 %v916_v59  ;;  %v1730_v19 = vpack.c.b16 %v1008_v5, %v1007_v61  ;;  %v706_v20 = vpop.f32.mrf.mxu0 }
  0xcd   : > { %v428_v16 = vpop.permute.xlu0 %427 }
  0xce   : > { %v1732_v21 = vpack.c.b16 %v1006_v62, %v1005_v8  ;;  %v408_v28 = vpop.permute.xlu2 %407 }
  0xcf   : > { %v702_v29 = vadd.f32 %v701_v30, %v408_v28 }
  0xd1   : > { %v777_v31 = vmax.f32 %v702_v29, 0.0 }
  0xd2   : > { %v1750_v8 = vpop.f32.mrf.mxu1 }
  0xd3   : > { %v1734_v24 = vpop.f32.mrf.mxu3  ;;  %v809_v39 = vpack.c.bf16 %v777_v31, %v777_v31 }
  0xd4   : > { %v418_v23 = vpop.permute.xlu1 %417  ;;  %v709_v27 = vpop.f32.mrf.mxu0 }
  0xd5   : > { %v413_v25 = vpop.permute.xlu0 %412  ;;  %v897_v42 = vunpack.c.l.b16 %v809_v39  ;;  %v710_v39 = vadd.f32 %v709_v27, %v1716_v22 }
  0xdb   : > { %v759_v33 = vpop.f32.mrf.mxu3 }
  0xdc   : > { %v403_v32 = vpop.permute.xlu1 %402  ;;  %v711_v36 = vpop.f32.mrf.mxu0 }
  0xdd   : > { %v1736_v34 = vpop.permute.xlu0 %477  ;;  %v700_v35 = vadd.f32 %v1714_v18, %v403_v32  ;;  %v712_v28 = vadd.f32 %v711_v36, %v428_v16 }
  0xdf   : > { %v776_v37 = vmax.f32 %v700_v35, 0.0 }
  0xe1   : > { %v808_v40 = vpack.c.bf16 %v776_v37, %v776_v37  ;;  %v707_v37 = vadd.f32 %v706_v20, %v418_v23 }
  0xe3   : > { %v896_v41 = vunpack.c.l.b16 %v808_v40  ;;  %v761_v44 = vpop.f32.mrf.mxu3 }
  0xe4   : > { %v398_v43 = vpop.permute.xlu1 %397  ;;  %v714_v47 = vpop.f32.mrf.mxu0 }
  0xe5   : > { %v697_v45 = vadd.f32 %v1706_v12, %v398_v43  ;;  %v393_v46 = vpop.permute.xlu0 %392  ;;  %v1741_v48 = vpack.c.b16 %v897_v42, %v896_v41  ;;  %v715_v61 = vadd.f32 %v714_v47, %v1718_v26  ;;  %v705_v26 = vadd.f32 %v1722_v51, %v413_v25 }
  0xe6   : > { %v695_v30 = vadd.f32 %v1702_v7, %v393_v46  ;;  %v781_v42 = vmax.f32 %v712_v28, 0.0  ;;  %v779_v46 = vmax.f32 %v707_v37, 0.0  ;;  %v760_v51 = vadd.f32 %v759_v33, %v1700_v6 }
  0xe7   : > { %v775_v49 = vmax.f32 %v697_v45, 0.0  ;;  %v782_v40 = vmax.f32 %v715_v61, 0.0  ;;  %v778_v47 = vmax.f32 %v705_v26, 0.0 }
  0xe8   : > { %v774_v50 = vmax.f32 %v695_v30, 0.0  ;;  %v813_v25 = vpack.c.bf16 %v781_v42, %v781_v42  ;;  %v811_v6 = vpack.c.bf16 %v779_v46, %v779_v46 }
  0xe9   : > { %v807_v52 = vpack.c.bf16 %v775_v49, %v775_v49  ;;  %v814_v20 = vpack.c.bf16 %v782_v40, %v782_v40  ;;  %v810_v33 = vpack.c.bf16 %v778_v47, %v778_v47 }
  0xea   : > { %v806_v18 = vpack.c.bf16 %v774_v50, %v774_v50 }
  0xeb   : > { %v895_v53 = vunpack.c.l.b16 %v807_v52  ;;  %v764_v55 = vpop.f32.mrf.mxu3 }
  0xec   : > { %v894_v54 = vunpack.c.l.b16 %v806_v18  ;;  %v716_v56 = vpop.f32.mrf.mxu0  ;;  %v765_v43 = vadd.f32 %v764_v55, %v1688_v63 }
  0xed   : > { %v717_v7 = vadd.f32 %v716_v56, %v1708_v14  ;;  %v902_v56 = vunpack.c.l.b16 %v814_v20 }
  0xee   : > { %v1743_v57 = vpack.c.b16 %v895_v53, %v894_v54  ;;  %v802_v49 = vmax.f32 %v765_v43, 0.0  ;;  %v755_v53 = vadd.f32 %v1726_v13, %v1704_v9  ;;  %v739_v54 = vpop.f32.mrf.mxu1 }
  0xef   : > { %v783_v31 = vmax.f32 %v717_v7, 0.0 }
  0xf0   : > { %v834_v7 = vpack.c.bf16 %v802_v49, %v802_v49 }
  0xf1   : > { %v815_v16 = vpack.c.bf16 %v783_v31, %v783_v31  ;;  %v899_v31 = vunpack.c.l.b16 %v811_v6 }
  0xf2   : > { %v1013_v37 = vunpack.c.l.b16 %v834_v7 }
  0xf3   : > { %v766_v59 = vpop.f32.mrf.mxu3  ;;  %v903_v63 = vunpack.c.l.b16 %v815_v16 }
  0xf4   : > { %v719_v12 = vpop.f32.mrf.mxu0 }
  0xf5   : > { %v720_v60 = vadd.f32 %v719_v12, %v1712_v17  ;;  %v767_v17 = vadd.f32 %v766_v59, %v1694_v2  ;;  %v800_v12 = vmax.f32 %v760_v51, 0.0  ;;  %v914_v61 = vpack.c.b16 %v903_v63, %v902_v56 }
  0xf7   : > { %v784_v5 = vmax.f32 %v720_v60, 0.0  ;;  %v803_v22 = vmax.f32 %v767_v17, 0.0  ;;  %v901_v60 = vunpack.c.l.b16 %v813_v25 }
  0xf9   : > { %v816_v14 = vpack.c.bf16 %v784_v5, %v784_v5 }
  0xfb   : > { %v769_v62 = vpop.f32.mrf.mxu3  ;;  %v904_v27 = vunpack.c.l.b16 %v816_v14 }
  0xfc   : > { %v721_v29 = vpop.f32.mrf.mxu0  ;;  %v770_v32 = vadd.f32 %v769_v62, %v1690_v0  ;;  %v780_v0 = vmax.f32 %v710_v39, 0.0 }
  0xfd   : > { %v722_v35 = vadd.f32 %v721_v29, %v1710_v15  ;;  %v762_v15 = vadd.f32 %v761_v44, %v1698_v4  ;;  %v757_v4 = vadd.f32 %v1734_v24, %v1692_v1  ;;  %v798_v24 = vmax.f32 %v755_v53, 0.0  ;;  %v854_v53 = vpop.permute.xlu0 %853 }
  0xfe   : > { %v804_v36 = vmax.f32 %v770_v32, 0.0  ;;  %v812_v44 = vpack.c.bf16 %v780_v0, %v780_v0  ;;  %v898_v32 = vunpack.c.l.b16 %v810_v33  ;;  %v740_v0 = vadd.f32 %v739_v54, %v1724_v11 }
  0xff   : > { %v785_v41 = vmax.f32 %v722_v35, 0.0  ;;  %v801_v55 = vmax.f32 %v762_v15, 0.0  ;;  %v799_v28 = vmax.f32 %v757_v4, 0.0  ;;  %v832_v35 = vpack.c.bf16 %v800_v12, %v800_v12  ;;  %v956_v4 = vpop.permute.xlu1 %955 }
 0x100   : > { %v836_v50 = vpack.c.bf16 %v804_v36, %v804_v36  ;;  %v900_v9 = vunpack.c.l.b16 %v812_v44  ;;  %v830_v26 = vpack.c.bf16 %v798_v24, %v798_v24  ;;  %v912_v43 = vpack.c.b16 %v899_v31, %v898_v32 }
 0x101   : > { %v817_v45 = vpack.c.bf16 %v785_v41, %v785_v41  ;;  %v833_v13 = vpack.c.bf16 %v801_v55, %v801_v55  ;;  %v831_v40 = vpack.c.bf16 %v799_v28, %v799_v28  ;;  %v741_v41 = vpop.f32.mrf.mxu1  ;;  %v1011_v42 = vunpack.c.l.b16 %v832_v35 }
 0x102   : > { %v1015_v62 = vunpack.c.l.b16 %v836_v50  ;;  %v913_v39 = vpack.c.b16 %v901_v60, %v900_v9  ;;  %v742_v36 = vadd.f32 %v741_v41, %v1720_v38  ;;  %v1009_v46 = vunpack.c.l.b16 %v830_v26  ;;  %v1286_v38 = vld [vmem:[%s1825_s3] sm:$0xff] }
 0x103   : > { %v771_v23 = vpop.f32.mrf.mxu3  ;;  %v905_v30 = vunpack.c.l.b16 %v817_v45  ;;  %v1012_v17 = vunpack.c.l.b16 %v833_v13  ;;  %v1010_v16 = vunpack.c.l.b16 %v831_v40  ;;  %v737_v15 = vadd.f32 %v1750_v8, %v1736_v34 }
 0x104   : > { %v772_v2 = vadd.f32 %v771_v23, %v1696_v3  ;;  %v835_v3 = vpack.c.bf16 %v803_v22, %v803_v22  ;;  %v793_v20 = vmax.f32 %v742_v36, 0.0  ;;  %v735_v22 = vadd.f32 %v1745_v58, %v1728_v10 }
 0x105   : > { %v915_v18 = vpack.c.b16 %v905_v30, %v904_v27  ;;  %v1022_v45 = vpack.c.b16 %v1012_v17, %v1011_v42  ;;  %v1021_v23 = vpack.c.b16 %v1010_v16, %v1009_v46  ;;  %v792_v27 = vmax.f32 %v740_v0, 0.0  ;;  %v859_v56 = vpop.permute.xlu0 %858 }
 0x106   : > { %v805_v52 = vmax.f32 %v772_v2, 0.0  ;;  %v1014_v29 = vunpack.c.l.b16 %v835_v3  ;;  %v791_v30 = vmax.f32 %v737_v15, 0.0  ;;  %v825_v2 = vpack.c.bf16 %v793_v20, %v793_v20 }
 0x107   : > { %928 = vmatpush.bf16.msrb.mxu1 %v915_v18  ;;  %v790_v11 = vmax.f32 %v735_v22, 0.0  ;;  %v824_v47 = vpack.c.bf16 %v792_v27, %v792_v27  ;;  %v849_v18 = vpop.permute.xlu2 %848  ;;  %v966_v6 = vpop.permute.xlu1 %965 }
 0x108   : > { %v837_v59 = vpack.c.bf16 %v805_v52, %v805_v52  ;;  %v1023_v14 = vpack.c.b16 %v1014_v29, %v1013_v37  ;;  %v823_v34 = vpack.c.bf16 %v791_v30, %v791_v30 }
 0x109   : > { %v822_v8 = vpack.c.bf16 %v790_v11, %v790_v11  ;;  %v1003_v51 = vunpack.c.l.b16 %v824_v47 }
 0x10a   : > { %v1016_v5 = vunpack.c.l.b16 %v837_v59  ;;  %v1002_v10 = vunpack.c.l.b16 %v823_v34 }
 0x10b   : > { %929 = vmatpush.bf16.msrb.mxu1 %v914_v61  ;;  %v1001_v25 = vunpack.c.l.b16 %v822_v8 }
 0x10c   : > { %v1024_v1 = vpack.c.b16 %v1016_v5, %v1015_v62 }
 0x10d   : > { %v1017_v49 = vpack.c.b16 %v1002_v10, %v1001_v25  ;;  %v971_v29 = vpop.permute.xlu0 %970 }
 0x10e   : > { %1033 = vmatpush.bf16.msra.mxu2 %v1024_v1 }
 0x10f   : > { %930 = vmatpush.bf16.msrb.mxu1 %v913_v39  ;;  %v961_v55 = vpop.permute.xlu2 %960 }
 0x112   : > { %1034 = vmatpush.bf16.msra.mxu2 %v1023_v14 }
 0x113   : > { %931 = vmatpush.bf16.msrb.mxu1 %v912_v43 }
 0x116   : > { %1035 = vmatpush.bf16.msra.mxu2 %v1022_v45 }
 0x117   : > { %932 = vmatpush.bf16.msrb.mxu1 %v1741_v48  ;;  %v1004_v48 = vunpack.c.l.b16 %v825_v2  ;;  %v864_v28 = vpop.permute.xlu2 %863 }
 0x119   : > { %v1018_v58 = vpack.c.b16 %v1004_v48, %v1003_v51 }
 0x11a   : > { %1036 = vmatpush.bf16.msra.mxu2 %v1021_v23 }
 0x11b   : > { %933 = vmatpush.bf16.msrb.mxu1 %v1743_v57  ;;  %v1288_v57 = vld [vmem:[%s1826_s4] sm:$0xff] }
 0x11e   : > { %1037 = vmatpush.bf16.msra.mxu2 %v1730_v19  ;;  %934 = vmatmul.bf16.vlgmr.msrb.gmra.mxu1 %v1286_v38  ;;  %v1287_v19 = vld [vmem:[%s1825_s3 + $0x8] sm:$0xff] }
 0x122   : > { %1038 = vmatpush.bf16.msra.mxu2 %v1732_v21  ;;  %v1289_v21 = vld [vmem:[%s1826_s4 + $0x8] sm:$0xff] }
 0x126   : > { %1039 = vmatpush.bf16.msra.mxu2 %v1018_v58 }
 0x12a   : > { %1040 = vmatpush.bf16.msra.mxu2 %v1017_v49 }
 0x12d   : > { %1041 = vmatmul.bf16.vlgmr.msra.gmra.mxu2 %v1288_v57 }
 0x12e   : > { %939 = vmatmul.bf16.gmra.mxu1 %v1287_v19 }
 0x13d   : > { %1046 = vmatmul.bf16.gmra.mxu2 %v1289_v21 }
 0x19b   : > { %v935_v63 = vpop.f32.mrf.mxu1 }
 0x19c   : > { %v936_v7 = vadd.f32 %v935_v63, %v849_v18 }
 0x1a3   : > { %v937_v52 = vpop.f32.mrf.mxu1 }
 0x1a4   : > { %v938_v33 = vadd.f32 %v937_v52, %v854_v53 }
 0x1ab   : > { %v940_v54 = vpop.f32.mrf.mxu1 }
 0x1ac   : > { %v941_v61 = vadd.f32 %v940_v54, %v859_v56 }
 0x1b0   : > { %v1042_v50 = vpop.f32.mrf.mxu2 }
 0x1b1   : > { %v1043_v12 = vadd.f32 %v1042_v50, %v956_v4 }
 0x1b3   : > { %v942_v5 = vpop.f32.mrf.mxu1  ;;  %v1052_v9 = vmul.f32 %v1043_v12, %v936_v7 }
 0x1b4   : > { %v943_v24 = vadd.f32 %v942_v5, %v864_v28 }
 0x1b8   : > { %v1044_v44 = vpop.f32.mrf.mxu2 }
 0x1b9   : > { %v1045_v59 = vadd.f32 %v1044_v44, %v961_v55 }
 0x1bb   : > { %v1053_v62 = vmul.f32 %v1045_v59, %v938_v33 }
 0x1bd   : > { %v1056_v31 = vadd.f32 %v1053_v62, %v1052_v9 }
 0x1c0   : > { %v1047_v3 = vpop.f32.mrf.mxu2 }
 0x1c1   : > { %v1048_v60 = vadd.f32 %v1047_v3, %v966_v6 }
 0x1c3   : > { %v1054_v13 = vmul.f32 %v1048_v60, %v941_v61 }
 0x1c5   : > { %v1057_v35 = vadd.f32 %v1056_v31, %v1054_v13 }
 0x1c8   : > { %v1049_v1 = vpop.f32.mrf.mxu2 }
 0x1c9   : > { %v1050_v32 = vadd.f32 %v1049_v1, %v971_v29 }
 0x1cb   : > { %v1055_v37 = vmul.f32 %v1050_v32, %v943_v24 }
 0x1cd   : > { %v1058_v39 = vadd.f32 %v1057_v35, %v1055_v37 }
 0x1cf   : > { %v1059_v40 = vrot.slane %v1058_v39, 4 }
 0x1d1   : > { %v1060_v17 = vadd.f32 %v1059_v40, %v1058_v39 }
 0x1d3   : > { %v1061_v14 = vrot.slane %v1060_v17, 2 }
 0x1d5   : > { %v1062_v41 = vadd.f32 %v1061_v14, %v1060_v17 }
 0x1d7   : > { %v1063_v26 = vrot.slane %v1062_v41, 1 }
 0x1d9   : > { %v1064_v42 = vadd.f32 %v1063_v26, %v1062_v41 }
 0x1db   : > { %v1266_v43 = vmul.f32 -1.442695, %v1064_v42 }
 0x1dd   : > { %1335 = vpow2.f32 %v1266_v43 }
 0x1e3   : > { %v1336_v16 = vpop.eup %1335 }
 0x1e4   : > { %v1068_v36 = vadd.f32 1.0, %v1336_v16 }
 0x1e6   : > { %1337 = vrcp.f32 %v1068_v36  ;;  %v1080_v15 = vand.u32 2147483648, %v1068_v36  ;;  %v1078_v23 = vand.u32 2147483647, %v1068_v36  ;;  %vm1074_vm2 = vweird.f32 %v1068_v36 }
 0x1e8   : > { %v1081_v27 = vor.u32 1.1754944e-38, %v1080_v15  ;;  %vm1079_vm4 = vcmp.eq.f32.partialorder %v1078_v23, 8.507059e+37 }
 0x1ec   : > { %v1338_v45 = vpop.eup %1337 }
 0x1ed   : > { %v1070_v46 = vmul.f32 %v1338_v45, %v1068_v36  ;;  %vm1075_vm1 = vweird.f32 %v1338_v45 }
 0x1ee   : > { %vm1076_vm3 = vmor %vm1074_vm2, %vm1075_vm1 }
 0x1ef   : > { %v1071_v0 = vsub.f32 1.0, %v1070_v46 }
 0x1f1   : > { %v1072_v20 = vmul.f32 %v1338_v45, %v1071_v0 }
 0x1f3   : > { %v1073_v22 = vadd.f32 %v1338_v45, %v1072_v20 }
 0x1f5   : > { %v1077_v38 = vsel %vm1076_vm3, %v1338_v45, %v1073_v22 }
 0x1f6   : > { %v1082_v30 = vsel %vm1079_vm4, %v1081_v27, %v1077_v38 }
 0x1f7   : > { %1084 = vst [vmem:[%s322_s15] sm:$0x1] %v1082_v30 }
 0x1f8   : > { %1366 = shalt.err (!%p1363_p5)
}
 0x1f9   : > { %1292 = dma.vmem_to_hbm [thread:$0]  (%p1482_p6), %s1097_s16, 16, %s1099_s17, %s1086_s28  }
 0x1fa PF: > { %s1110_s9 = sand.u32 1, %s1389_s24   ;;  %p1295_p7 = pnand %p1161_p9, %p1486_p8 }
 0x1fb   : > { %s1111_s8 = scalar_lea.sflag [#allocation4], %s1110_s9 }
 0x1fc   : > { %p1296_p10 = pneg %p1295_p7 }
 0x1fe   : > { %1384 = dma.done.wait (%p1296_p10), %s1111_s8, 16  }
 0x1ff   : > { %1386 = vsyncadd (%p1296_p10), %s1111_s8, 4294967280  ;;  %p17_p11 = scmp.ge.s32.totalorder %s1467_s30, 4   ;;  %s1832_s24 = smov %s1393_s25 }
 0x200   : > { %s1833_s25 = smov %s1397_s26  ;;  %s1834_s26 = smov %s1480_s10 }
 0x201   : > { %s1835_s27 = smov %s1467_s30  ;;  %19 = sbr.rel (!%p17_p11) target bundleno = 3 (0x3), region = 129 }
 0x206   :  { %1116 = vsyncpa [#allocation4], 1 }
 0x207   :  { %1118 = vsyncpa [#allocation4 + $0x1], 1 }

</bundles_post_ra>
